<compile_context>
chip_gen: v7x
topology: tpu7x:2x2x1
jax: 0.10.0
libtpu: 0.0.40
codegen_flags: <defaults>
</compile_context>

<pallas_src>
import jax
import jax.numpy as jnp
from jax.experimental import pallas as pl
from jax.experimental.pallas import tpu as pltpu

_MIB = 1024 * 1024


def _round_up(x, m):
    return ((x + m - 1) // m) * m


def _mlp_kernel(x_ref, wfc_ref, bfc_ref, wproj_ref, bproj_ref, o_ref, acc_ref):
    k = pl.program_id(1)

    @pl.when(k == 0)
    def _init():
        # Fold c_proj bias into the accumulator init (saves a [tm, H] f32 add
        # in the finalize epilogue that sits on the store-slot path).
        acc_ref[...] = jnp.broadcast_to(
            bproj_ref[...].astype(jnp.float32), acc_ref.shape)

    # c_fc slice: [tm, H] @ [H, ti] -> [tm, ti], f32 accumulation on the MXU.
    h = jnp.dot(x_ref[...], wfc_ref[...], preferred_element_type=jnp.float32)
    h = h + bfc_ref[...].astype(jnp.float32)

    # gelu_pytorch_tanh (Starcoder2 default hidden_act), f32 elementwise.
    # 0.5*h*(1+tanh(c*(h + 0.044715*h^3))) == 0.5*h*(1+tanh(h*(c + c*0.044715*h^2)))
    c = 0.7978845608028654  # sqrt(2/pi)
    h2 = h * h
    g = 0.5 * h * (1.0 + jnp.tanh(h * (c + (c * 0.044715) * h2)))

    # c_proj partial: [tm, ti] @ [ti, H] -> accumulate into the f32 scratch.
    acc_ref[...] += jnp.dot(
        g.astype(wproj_ref.dtype), wproj_ref[...],
        preferred_element_type=jnp.float32)

    @pl.when(k == pl.num_programs(1) - 1)
    def _finalize():
        # residual_dropout: identity in eval mode.
        o_ref[...] = acc_ref[...].astype(o_ref.dtype)


def _est_vmem_bytes(tm, ti, H, dtype):
    s = jnp.dtype(dtype).itemsize
    # double-buffered pipelined operands + output
    dbl = 2 * s * (tm * H + H * ti + ti + ti * H + H + tm * H)
    acc = 4 * tm * H              # resident f32 accumulator scratch
    interm = 3 * 4 * tm * ti      # live f32 GELU intermediates between the dots
    return dbl + acc + interm


def _device_info():
    kind = ""
    try:
        kind = jax.devices()[0].device_kind.lower()
    except Exception:
        pass
    vmem_cap = None
    try:
        vmem_cap = int(pltpu.get_tpu_info().vmem_capacity_bytes)
    except Exception:
        vmem_cap = None
    if vmem_cap is None:
        if "v7" in kind:
            vmem_cap = 64 * _MIB      # per-TC VMEM on v7x
        elif "v6" in kind or "v5" in kind:
            vmem_cap = 128 * _MIB
        else:
            vmem_cap = 64 * _MIB      # conservative fallback
    return kind, vmem_cap


def _default_tiles(kind):
    if "v7" in kind:
        return 512, 256
    if "v6" in kind:
        return 512, 512
    if "v5" in kind:
        return 256, 512
    return 256, 256


def starcoder2_mlp(hidden_states, w_fc, b_fc, w_proj, b_proj, *, tm=None, ti=None):
    """hidden_states: [B, S, H]; w_fc: [H, I]; b_fc: [I]; w_proj: [I, H]; b_proj: [H]."""
    B, S, H = hidden_states.shape
    I = w_fc.shape[1]
    M = B * S
    dtype = hidden_states.dtype

    kind, vmem_cap = _device_info()
    d_tm, d_ti = _default_tiles(kind)
    tm = d_tm if tm is None else tm
    ti = d_ti if ti is None else ti

    # --- intermediate-dim tile: lane-aligned (mult of 128) and divides I.
    ti = min(ti, I)
    if I % ti != 0:
        cand = ti - (ti % 128)
        while cand >= 128 and I % cand != 0:
            cand -= 128
        ti = cand if cand >= 128 else I

    # --- token tile: multiple of 8 (sublane), M padded to a multiple of tm.
    tm = min(tm, _round_up(M, 8))

    # Shrink tiles if the estimated working set overflows the VMEM budget
    # (spend budget on tm, shrink ti first).
    budget = max(vmem_cap - 8 * _MIB, 24 * _MIB)
    while (_est_vmem_bytes(tm, ti, H, dtype) > budget and ti > 128
           and ti % 2 == 0 and I % (ti // 2) == 0):
        ti //= 2
    while _est_vmem_bytes(tm, ti, H, dtype) > budget and tm > 256:
        tm = max(256, tm // 2)

    # v7x megacore: give the "parallel" token axis >= 2 tiles for small M so
    # the second TensorCore doesn't idle.
    if "v7" in kind and M >= 16 and _round_up(M, tm) // tm == 1:
        tm = _round_up((M + 1) // 2, 8)

    M_pad = _round_up(M, tm)

    x2d = hidden_states.reshape(M, H)
    if M_pad != M:
        x2d = jnp.pad(x2d, ((0, M_pad - M), (0, 0)))
    bfc2d = b_fc.reshape(1, I)
    bproj2d = b_proj.reshape(1, H)

    vmem_limit = int(min(max(1.5 * _est_vmem_bytes(tm, ti, H, dtype), 32 * _MIB),
                         budget))

    out2d = pl.pallas_call(
        _mlp_kernel,
        out_shape=jax.ShapeDtypeStruct((M_pad, H), dtype),
        grid=(M_pad // tm, I // ti),
        in_specs=[
            pl.BlockSpec((tm, H), lambda i, k: (i, 0)),   # x token tile (k-invariant)
            pl.BlockSpec((H, ti), lambda i, k: (0, k)),   # w_fc I-slice
            pl.BlockSpec((1, ti), lambda i, k: (0, k)),   # b_fc I-slice
            pl.BlockSpec((ti, H), lambda i, k: (k, 0)),   # w_proj I-slice
            pl.BlockSpec((1, H), lambda i, k: (0, 0)),    # b_proj (k-invariant)
        ],
        out_specs=pl.BlockSpec((tm, H), lambda i, k: (i, 0)),
        scratch_shapes=[pltpu.VMEM((tm, H), jnp.float32)],
        compiler_params=pltpu.CompilerParams(
            dimension_semantics=("parallel", "arbitrary"),
            vmem_limit_bytes=vmem_limit),
    )(x2d, w_fc, bfc2d, w_proj, bproj2d)

    if M_pad != M:
        out2d = out2d[:M]
    return out2d.reshape(B, S, H)


def _reference(hidden_states, w_fc, b_fc, w_proj, b_proj):
    h = hidden_states.astype(jnp.float32) @ w_fc.astype(jnp.float32) + b_fc
    h = jax.nn.gelu(h, approximate=True)
    y = h @ w_proj.astype(jnp.float32) + b_proj
    return y.astype(hidden_states.dtype)


if __name__ == "__main__":
    # Small synthetic config: hidden_size=32, intermediate_size=256, use_bias=True.
    # ti=128 forces 2 reduction steps, exercising the accumulator path.
    B, S, H, I = 2, 8, 32, 256

    key = jax.random.PRNGKey(0)
    k_x, k_wfc, k_bfc, k_wproj, k_bproj, k_x2 = jax.random.split(key, 6)

    x = jax.random.normal(k_x, (B, S, H), dtype=jnp.float32)
    w_fc = jax.random.normal(k_wfc, (H, I), dtype=jnp.float32) * 0.05
    b_fc = jax.random.normal(k_bfc, (I,), dtype=jnp.float32) * 0.05
    w_proj = jax.random.normal(k_wproj, (I, H), dtype=jnp.float32) * 0.05
    b_proj = jax.random.normal(k_bproj, (H,), dtype=jnp.float32) * 0.05

    out = starcoder2_mlp(x, w_fc, b_fc, w_proj, b_proj, ti=128)
    out = jax.block_until_ready(out)
    ref = _reference(x, w_fc, b_fc, w_proj, b_proj)
    assert out.shape == (B, S, H)
    assert jnp.allclose(out, ref, atol=1e-4, rtol=1e-4), "mismatch vs reference"

    # Ragged M (B*S not a multiple of the token tile) exercises the padding path.
    x2 = jax.random.normal(k_x2, (1, 5, H), dtype=jnp.float32)
    out2 = starcoder2_mlp(x2, w_fc, b_fc, w_proj, b_proj, ti=128)
    out2 = jax.block_until_ready(out2)
    ref2 = _reference(x2, w_fc, b_fc, w_proj, b_proj)
    assert out2.shape == (1, 5, H)
    assert jnp.allclose(out2, ref2, atol=1e-4, rtol=1e-4), "mismatch vs reference (ragged)"

    print("KERNEL_OK")
</pallas_src>

<mosaic_0001>
module attributes {stable_mosaic.version = 11 : i64} {
  func.func @_mlp_kernel(%arg0: i32, %arg1: i32, %arg2: memref<16x32xf32, #tpu.memory_space<vmem>>, %arg3: memref<32x128xf32, #tpu.memory_space<vmem>>, %arg4: memref<1x128xf32, #tpu.memory_space<vmem>>, %arg5: memref<128x32xf32, #tpu.memory_space<vmem>>, %arg6: memref<1x32xf32, #tpu.memory_space<vmem>>, %arg7: memref<16x32xf32, #tpu.memory_space<vmem>>, %arg8: memref<16x32xf32, #tpu.memory_space<vmem>>) attributes {dimension_semantics = [#tpu.dimension_semantics<parallel>, #tpu.dimension_semantics<arbitrary>], iteration_bounds = array<i64: 1, 2>, scalar_prefetch = 0 : i64, scratch_operands = 1 : i64, tpu.core_type = #tpu.core_type<tc>, window_params = [{transform_indices = @transform_0, window_bounds = array<i64: 16, 32>}, {transform_indices = @transform_1, window_bounds = array<i64: 32, 128>}, {transform_indices = @transform_2, window_bounds = array<i64: 1, 128>}, {transform_indices = @transform_3, window_bounds = array<i64: 128, 32>}, {pipeline_mode = #tpu.pipeline_mode<synchronous>, transform_indices = @transform_4, window_bounds = array<i64: 1, 32>}, {transform_indices = @transform_5, window_bounds = array<i64: 16, 32>}]} {
    %c0_i32 = arith.constant 0 : i32
    %0 = arith.cmpi eq, %arg1, %c0_i32 : i32
    %1 = arith.extui %0 : i1 to i32
    %c0_i32_0 = arith.constant 0 : i32
    %2 = arith.cmpi ne, %1, %c0_i32_0 : i32
    scf.if %2 {
      %c0_18 = arith.constant 0 : index
      %c0_19 = arith.constant 0 : index
      %29 = vector.load %arg6[%c0_18, %c0_19] : memref<1x32xf32, #tpu.memory_space<vmem>>, vector<1x32xf32>
      %30 = vector.shape_cast %29 : vector<1x32xf32> to vector<1x32xf32>
      %31 = vector.broadcast %30 : vector<1x32xf32> to vector<16x32xf32>
      %c0_20 = arith.constant 0 : index
      %c0_21 = arith.constant 0 : index
      %32 = vector.load %arg8[%c0_20, %c0_21] : memref<16x32xf32, #tpu.memory_space<vmem>>, vector<16x32xf32>
      tpu.vector_store %arg8[%c0_20, %c0_21], %31 {strides = array<i32>} : memref<16x32xf32, #tpu.memory_space<vmem>>, vector<16x32xf32>,
    } else {
    }
    %c0 = arith.constant 0 : index
    %c0_1 = arith.constant 0 : index
    %3 = vector.load %arg2[%c0, %c0_1] : memref<16x32xf32, #tpu.memory_space<vmem>>, vector<16x32xf32>
    %c0_2 = arith.constant 0 : index
    %c0_3 = arith.constant 0 : index
    %4 = vector.load %arg3[%c0_2, %c0_3] : memref<32x128xf32, #tpu.memory_space<vmem>>, vector<32x128xf32>
    %cst = arith.constant dense<0.000000e+00> : vector<16x128xf32>
    %5 = tpu.matmul %3, %4, %cst {dimension_numbers = #tpu.dot_dimension_numbers<[1], [0], [0], [1], [0, 0, 1, 1], [], []>} : vector<16x32xf32>, vector<32x128xf32>, vector<16x128xf32> -> vector<16x128xf32>
    %c0_4 = arith.constant 0 : index
    %c0_5 = arith.constant 0 : index
    %6 = vector.load %arg4[%c0_4, %c0_5] : memref<1x128xf32, #tpu.memory_space<vmem>>, vector<1x128xf32>
    %7 = vector.broadcast %6 : vector<1x128xf32> to vector<16x128xf32>
    %8 = arith.addf %5, %7 : vector<16x128xf32>
    %9 = arith.mulf %8, %8 : vector<16x128xf32>
    %cst_6 = arith.constant 5.000000e-01 : f32
    %10 = vector.broadcast %cst_6 : f32 to vector<16x128xf32>
    %11 = arith.mulf %10, %8 : vector<16x128xf32>
    %cst_7 = arith.constant 0.0356774069 : f32
    %12 = vector.broadcast %cst_7 : f32 to vector<16x128xf32>
    %13 = arith.mulf %12, %9 : vector<16x128xf32>
    %cst_8 = arith.constant 0.797884583 : f32
    %14 = vector.broadcast %cst_8 : f32 to vector<16x128xf32>
    %15 = arith.addf %14, %13 : vector<16x128xf32>
    %16 = arith.mulf %8, %15 : vector<16x128xf32>
    %17 = math.tanh %16 : vector<16x128xf32>
    %cst_9 = arith.constant 1.000000e+00 : f32
    %18 = vector.broadcast %cst_9 : f32 to vector<16x128xf32>
    %19 = arith.addf %18, %17 : vector<16x128xf32>
    %20 = arith.mulf %11, %19 : vector<16x128xf32>
    %c0_10 = arith.constant 0 : index
    %c0_11 = arith.constant 0 : index
    %21 = vector.load %arg8[%c0_10, %c0_11] : memref<16x32xf32, #tpu.memory_space<vmem>>, vector<16x32xf32>
    %c0_12 = arith.constant 0 : index
    %c0_13 = arith.constant 0 : index
    %22 = vector.load %arg5[%c0_12, %c0_13] : memref<128x32xf32, #tpu.memory_space<vmem>>, vector<128x32xf32>
    %cst_14 = arith.constant dense<0.000000e+00> : vector<16x32xf32>
    %23 = tpu.matmul %20, %22, %cst_14 {dimension_numbers = #tpu.dot_dimension_numbers<[1], [0], [0], [1], [0, 0, 1, 1], [], []>} : vector<16x128xf32>, vector<128x32xf32>, vector<16x32xf32> -> vector<16x32xf32>
    %24 = arith.addf %21, %23 : vector<16x32xf32>
    %c0_15 = arith.constant 0 : index
    %c0_16 = arith.constant 0 : index
    %25 = vector.load %arg8[%c0_15, %c0_16] : memref<16x32xf32, #tpu.memory_space<vmem>>, vector<16x32xf32>
    tpu.vector_store %arg8[%c0_15, %c0_16], %24 {strides = array<i32>} : memref<16x32xf32, #tpu.memory_space<vmem>>, vector<16x32xf32>,
    %c1_i32 = arith.constant 1 : i32
    %26 = arith.cmpi eq, %arg1, %c1_i32 : i32
    %27 = arith.extui %26 : i1 to i32
    %c0_i32_17 = arith.constant 0 : i32
    %28 = arith.cmpi ne, %27, %c0_i32_17 : i32
    scf.if %28 {
      %c0_18 = arith.constant 0 : index
      %c0_19 = arith.constant 0 : index
      %29 = vector.load %arg8[%c0_18, %c0_19] : memref<16x32xf32, #tpu.memory_space<vmem>>, vector<16x32xf32>
      %c0_20 = arith.constant 0 : index
      %c0_21 = arith.constant 0 : index
      %30 = vector.load %arg7[%c0_20, %c0_21] : memref<16x32xf32, #tpu.memory_space<vmem>>, vector<16x32xf32>
      tpu.vector_store %arg7[%c0_20, %c0_21], %29 {strides = array<i32>} : memref<16x32xf32, #tpu.memory_space<vmem>>, vector<16x32xf32>,
    } else {
    }
    return
  }
  func.func @transform_0(%arg0: i32, %arg1: i32) -> (i32, i32) {
    %c0_i32 = arith.constant 0 : i32
    %c0_i32_0 = arith.constant 0 : i32
    return %arg0, %c0_i32 : i32, i32
  }
  func.func @transform_1(%arg0: i32, %arg1: i32) -> (i32, i32) {
    %c0_i32 = arith.constant 0 : i32
    %c0_i32_0 = arith.constant 0 : i32
    return %c0_i32, %arg1 : i32, i32
  }
  func.func @transform_2(%arg0: i32, %arg1: i32) -> (i32, i32) {
    %c0_i32 = arith.constant 0 : i32
    %c0_i32_0 = arith.constant 0 : i32
    return %c0_i32, %arg1 : i32, i32
  }
  func.func @transform_3(%arg0: i32, %arg1: i32) -> (i32, i32) {
    %c0_i32 = arith.constant 0 : i32
    %c0_i32_0 = arith.constant 0 : i32
    return %arg1, %c0_i32 : i32, i32
  }
  func.func @transform_4(%arg0: i32, %arg1: i32) -> (i32, i32) {
    %c0_i32 = arith.constant 0 : i32
    %c0_i32_0 = arith.constant 0 : i32
    %c0_i32_1 = arith.constant 0 : i32
    return %c0_i32, %c0_i32_0 : i32, i32
  }
  func.func @transform_5(%arg0: i32, %arg1: i32) -> (i32, i32) {
    %c0_i32 = arith.constant 0 : i32
    %c0_i32_0 = arith.constant 0 : i32
    return %arg0, %c0_i32 : i32, i32
  }
}

</mosaic_0001>

<bundles_post_ra>
// kernel: tpu_custom_call.1
= control target key start
LH: loop header
LB: loop body
LE: loop exit
PB: predicated region body
PF: predicated region fallthrough
CT: control target
= control target key end

     0   :  { %10 = vsyncpa [#allocation5], 0  ;;  %s953_s18 = smov 0   ;;  %s955_s19 = smov 0   ;;  %s1095_s0 = inlined_call_operand.vmem [shape: f32[16,32], index: 0, kind: input, shape index: {}]   ;;  %s1096_s1 = inlined_call_operand.vmem [shape: f32[32,256], index: 1, kind: input, shape index: {}]   ;;  %s1097_s2 = inlined_call_operand.vmem [shape: f32[1,256], index: 2, kind: input, shape index: {}]   ;;  %s1098_s3 = inlined_call_operand.vmem [shape: f32[256,32], index: 3, kind: input, shape index: {}]   ;;  %s1099_s4 = inlined_call_operand.vmem [shape: f32[1,32], index: 4, kind: input, shape index: {}]   ;;  %s1100_s5 = inlined_call_operand.hbm [shape: f32[16,32], index: 5, kind: output, shape index: {}]  }
   0x1   :  { %s957_s20 = smov 0   ;;  %s959_s21 = smov 0  }
   0x2   :  { %s961_s22 = smov 0  }
   0x3 LB: > { %s667_s23 = sadd.s32 4294967295, %s918_s22   ;;  %s25_s24 = sadd.s32 1, %s914_s21  ;;  %s918_s22 = sphi %s961_s22, %s16_s22   ;;  %s914_s21 = sphi %s959_s21, %s1105_s21   ;;  %s910_s20 = sphi %s957_s20, %s1104_s20   ;;  %s906_s19 = sphi %s955_s19, %s1103_s19   ;;  %s902_s18 = sphi %s953_s18, %s1102_s18  }
   0x4   : > { %p26_p0 = scmp.ge.s32.totalorder %s25_s24, 2  ;;  %p68_p1 = scmp.ne.s32.totalorder %s906_s19, %s902_s18 }
   0x5   : > { %p69_p2 = scmp.eq.s32.totalorder %s918_s22, 0  ;;  %s61_s26 = sadd.s32 1, %s906_s19 }
   0x6   : > { %s1107_s24 = smov (%p26_p0, %s25_s24), 0  ;;  %p670_p5 = scmp.ge.s32.totalorder %s918_s22, 2 }
   0x7   : > { %p70_p3 = por %p69_p2, %p68_p1  ;;  %s58_s25 = ssub.s32 %s914_s21, %s1107_s24 }
   0x8   : > { %p59_p4 = scmp.eq.s32.totalorder %s58_s25, 0  ;;  %205 = sbr.rel (%p670_p5) target bundleno = 22 (0x16), region = 24 }
   0xa   : > { %s989_s27 = scalar_select %p59_p4, %s906_s19, %s61_s26  }
   0xf   : > { %208 = sbr.rel (!%p70_p3) target bundleno = 22 (0x16), region = 28  ;;  %s210_s28 = sand.u32 (%p70_p3), 1, %s906_s19  }
  0x10   : > { %s672_s29 = sshll.u32 (%p70_p3), %s914_s21, 3  ;;  %s671_s30 = sshll.u32 (%p70_p3), %s210_s28, 5 }
  0x11   : > { %s214_s8 = scalar_lea.vmem (%p70_p3), %s1096_s1, %s672_s29  ;;  %s212_s9 = scalar_lea.vmem (%p70_p3), [#allocation3], %s671_s30 }
  0x12   : > { %v248_v0 = vld [vmem:[%s214_s8] sm:$0xff] (%p70_p3)  ;;  %v250_v1 = vld [vmem:[%s214_s8 + $0x10] sm:$0xff] (%p70_p3) }
  0x13   : > { %v252_v2 = vld [vmem:[%s214_s8 + $0x20] sm:$0xff] (%p70_p3)  ;;  %249 = vst [vmem:[%s212_s9] sm:$0xff] (%p70_p3), %v248_v0  ;;  %251 = vst [vmem:[%s212_s9 + $0x8] sm:$0xff] (%p70_p3), %v250_v1  ;;  %v254_v3 = vld [vmem:[%s214_s8 + $0x30] sm:$0xff] (%p70_p3) }
  0x14   : > { %253 = vst [vmem:[%s212_s9 + $0x10] sm:$0xff] (%p70_p3), %v252_v2  ;;  %255 = vst [vmem:[%s212_s9 + $0x18] sm:$0xff] (%p70_p3), %v254_v3 }
  0x16 PF: > { %p673_p6 = scmp.ge.s32.totalorder %s918_s22, 1  ;;  %p275_p7 = scmp.lt.s32.totalorder %s918_s22, 3 }
  0x18   : > { %p276_p8 = pnand %p673_p6, %p275_p7 }
  0x19   : > { %s282_s10 = sand.u32 (!%p276_p8), 1, %s902_s18   ;;  %p323_p9 = scmp.lt.s32.totalorder (!%p276_p8), %s910_s20, 1 }
  0x1a   : > { %279 = sbr.rel (%p276_p8) target bundleno = 541 (0x21d), region = 74  ;;  %s674_s11 = sshll.u32 (!%p276_p8), %s282_s10, 5 }
  0x1b   : > { %s675_s12 = sshll.u32 (!%p276_p8), %s910_s20, 4  ;;  %s284_s29 = scalar_lea.vmem (!%p276_p8), [#allocation3], %s674_s11 }
  0x1c   : > { %p327_p10 = scmp.lt.s32.totalorder (!%p276_p8), %s675_s12, 31  ;;  %p677_p11 = scmp.ne.s32.totalorder (!%p276_p8), %s910_s20, 0 }
  0x21   : > { %s1003_s13 = scalar_select %p323_p9, %s910_s20, 1 }
  0x22   : > { %s1109_s12 = smov (!%p327_p10, %s675_s12), 31  ;;  %336 = sbr.rel (%p677_p11) target bundleno = 41 (0x29), region = 82 }
  0x23   : > { %s325_s16 = scalar_lea.vmem %s1097_s2, %s1003_s13  ;;  %s676_s17 = sshll.u32 %s1109_s12, 3  ;;  %v678_v4 = vld [vmem:[%s1099_s4] ss:$0 sm:$0xff] (!%p677_p11)  ;;  %vm344_vm0 = vcmask (!%p677_p11), 261120  }
  0x24   : > { %s1012_s28 = scalar_lea.vmem %s1098_s3, %s676_s17  ;;  %345 = vst.msk [vmem:[#allocation2] sm:$0xff] (!%p677_p11), %vm344_vm0, %v678_v4  ;;  %346 = vst.msk [vmem:[#allocation2 + $0x8] sm:$0xff] (!%p677_p11), %vm344_vm0, %v678_v4 }
  0x29 PF: > { %v349_v5 = vld [vmem:[%s284_s29] sm:$0xff]  ;;  %v350_v6 = vld [vmem:[%s284_s29 + $0x8] sm:$0xff]  ;;  %v351_v7 = vld [vmem:[%s284_s29 + $0x10] sm:$0xff]  ;;  %vm360_vm1 = vcmask 261120   ;;  %p682_p12 = scmp.ne.s32.totalorder %s910_s20, 1 }
  0x2a   : > { %v757_v8 = vpack.c.bf16 %v350_v6, %v349_v5  ;;  %v352_v9 = vld [vmem:[%s284_s29 + $0x18] sm:$0xff]  ;;  %v347_v10 = vld [vmem:[%s1095_s0] sm:$0xff]  ;;  %v462_v16 = vld [vmem:[%s1012_s28 + $0x10] sm:$0xff] }
  0x2b   : > { %v761_v11 = vpack.c.bf16 %v352_v9, %v351_v7  ;;  %719 = vmatprep.mubr.msk.f32.mxu0 %vm360_vm1, %v347_v10  ;;  %v460_v12 = vld [vmem:[%s1012_s28] sm:$0xff]  ;;  %v461_v13 = vld [vmem:[%s1012_s28 + $0x8] sm:$0xff]  ;;  %v463_v17 = vld [vmem:[%s1012_s28 + $0x18] sm:$0xff] }
  0x2c   : > { %758 = vmatprep.subr.bf16.mxu0 %v757_v8  ;;  %v765_v14 = vpack.c.bf16 %v461_v13, %v460_v12  ;;  %v348_v15 = vld [vmem:[%s1095_s0 + $0x8] sm:$0xff]  ;;  %v769_v18 = vpack.c.bf16 %v463_v17, %v462_v16  ;;  %v464_v19 = vld [vmem:[%s1012_s28 + $0x20] sm:$0xff]  ;;  %v466_v22 = vld [vmem:[%s1012_s28 + $0x30] sm:$0xff] }
  0x2d   : > { %760 = vmatpush3.bf16.msra.mxu0 %v757_v8  ;;  %v465_v20 = vld [vmem:[%s1012_s28 + $0x28] sm:$0xff]  ;;  %v467_v23 = vld [vmem:[%s1012_s28 + $0x38] sm:$0xff]  ;;  %v468_v25 = vld [vmem:[%s1012_s28 + $0x40] sm:$0xff] }
  0x2e   : > { %762 = vmatprep.subr.bf16.mxu0 %v761_v11  ;;  %766 = vmatprep.subr.bf16.mxu1 %v765_v14  ;;  %v773_v21 = vpack.c.bf16 %v465_v20, %v464_v19  ;;  %v777_v24 = vpack.c.bf16 %v467_v23, %v466_v22  ;;  %v469_v26 = vld [vmem:[%s1012_s28 + $0x48] sm:$0xff]  ;;  %v470_v28 = vld [vmem:[%s1012_s28 + $0x50] sm:$0xff]  ;;  %v471_v29 = vld [vmem:[%s1012_s28 + $0x58] sm:$0xff] }
  0x2f   : > { %768 = vmatpush3.bf16.msra.mxu1 %v765_v14  ;;  %v781_v27 = vpack.c.bf16 %v469_v26, %v468_v25  ;;  %v472_v30 = vld [vmem:[%s1012_s28 + $0x60] sm:$0xff]  ;;  %v785_v31 = vpack.c.bf16 %v471_v29, %v470_v28  ;;  %v473_v32 = vld [vmem:[%s1012_s28 + $0x68] sm:$0xff]  ;;  %v474_v34 = vld [vmem:[%s1012_s28 + $0x70] sm:$0xff] }
  0x30   : > { %770 = vmatprep.subr.bf16.mxu1 %v769_v18  ;;  %v789_v33 = vpack.c.bf16 %v473_v32, %v472_v30  ;;  %v475_v35 = vld [vmem:[%s1012_s28 + $0x78] sm:$0xff]  ;;  %v679_v37 = vld [vmem:[%s325_s16] ss:$0 sm:$0xff]  ;;  %v459_v58 = vld [vmem:[#allocation2 + $0x8] sm:$0xff] }
  0x31   : > { %764 = vmatpush3.bf16.msra.mxu0 %v761_v11  ;;  %v793_v36 = vpack.c.bf16 %v475_v35, %v474_v34  ;;  %v458_v59 = vld [vmem:[#allocation2] sm:$0xff] }
  0x33   : > { %772 = vmatpush3.bf16.msra.mxu1 %v769_v18 }
  0x34   : > { %720 = vmatmul.mubr.msk.f32.vlgmr.msra.gmra.mrb[0].mxu0 %vm360_vm1, %v348_v15  ;;  %774 = vmatprep.subr.bf16.mxu1 %v773_v21 }
  0x37   : > { %776 = vmatpush3.bf16.msra.mxu1 %v773_v21 }
  0x38   : > { %778 = vmatprep.subr.bf16.mxu1 %v777_v24 }
  0x3b   : > { %780 = vmatpush3.bf16.msra.mxu1 %v777_v24 }
  0x3c   : > { %782 = vmatprep.subr.bf16.mxu1 %v781_v27 }
  0x3f   : > { %784 = vmatpush3.bf16.msra.mxu1 %v781_v27 }
  0x40   : > { %786 = vmatprep.subr.bf16.mxu1 %v785_v31 }
  0x43   : > { %788 = vmatpush3.bf16.msra.mxu1 %v785_v31 }
  0x44   : > { %790 = vmatprep.subr.bf16.mxu1 %v789_v33 }
  0x47   : > { %792 = vmatpush3.bf16.msra.mxu1 %v789_v33 }
  0x48   : > { %794 = vmatprep.subr.bf16.mxu1 %v793_v36 }
  0x4b   : > { %796 = vmatpush3.bf16.msra.mxu1 %v793_v36 }
 0x107   : > { %v721_v38 = vpop.f32.mrb[0].mxu0 }
 0x108   : > { %v439_v39 = vadd.f32 %v721_v38, %v679_v37  ;;  %v433_v40 = vpop.f32.mrb[1].mxu0 }
 0x109   : > { %v434_v41 = vadd.f32 %v679_v37, %v433_v40 }
 0x10a   : > { %v443_v42 = vmul.f32 %v439_v39, %v439_v39  ;;  %v445_v55 = vmul.f32 0.5, %v439_v39 }
 0x10b   : > { %v442_v43 = vmul.f32 %v434_v41, %v434_v41  ;;  %v444_v53 = vmul.f32 0.5, %v434_v41 }
 0x10c   : > { %v447_v44 = vmul.f32 0.035677407, %v443_v42 }
 0x10d   : > { %v446_v45 = vmul.f32 0.035677407, %v442_v43 }
 0x10e   : > { %v449_v46 = vadd.f32 0.7978846, %v447_v44 }
 0x10f   : > { %v448_v47 = vadd.f32 0.7978846, %v446_v45 }
 0x110   : > { %v451_v48 = vmul.f32 %v449_v46, %v439_v39 }
 0x111   : > { %v450_v49 = vmul.f32 %v448_v47, %v434_v41 }
 0x112   : > { %846 = vtanh.f32 %v451_v48 }
 0x113   : > { %848 = vtanh.f32 %v450_v49 }
 0x11c   : > { %v847_v50 = vpop.eup %846 }
 0x11d   : > { %v849_v51 = vpop.eup %848  ;;  %v455_v52 = vadd.f32 1.0, %v847_v50 }
 0x11e   : > { %v454_v54 = vadd.f32 1.0, %v849_v51 }
 0x11f   : > { %v457_v57 = vmul.f32 %v455_v52, %v445_v55 }
 0x120   : > { %v456_v56 = vmul.f32 %v454_v54, %v444_v53 }
 0x122   : > { %754 = vmatprep.mubr.f32.mxu1 %v456_v56 }
 0x123   : > { %755 = vmatmul.mubr.f32.vlgmr.msra.gmra.mrb[0].mxu1 %v457_v57 }
 0x1f4   : > { %558 = sbr.rel (%p682_p12) target bundleno = 515 (0x203), region = 86 }
 0x1f6   : > { %v756_v60 = vpop.f32.mrb[0].mxu1 }
 0x1f7   : > { %v552_v61 = vadd.f32 %v756_v60, %v459_v58  ;;  %v542_v62 = vpop.f32.mrb[1].mxu1 }
 0x1f8   : > { %v551_v63 = vadd.f32 %v542_v62, %v458_v59 }
 0x1f9   : > { %554 = vst.msk [vmem:[#allocation2 + $0x8] sm:$0xff] %vm360_vm1, %v552_v61 }
 0x1fa   : > { %553 = vst.msk [vmem:[#allocation2] sm:$0xff] %vm360_vm1, %v551_v63 }
 0x200   : > { %v560_v1 = vld [vmem:[#allocation2 + $0x8] sm:$0xff] }
 0x201   : > { %v559_v0 = vld [vmem:[#allocation2] sm:$0xff]  ;;  %562 = vst.msk [vmem:[#allocation4 + $0x8] sm:$0xff] %vm360_vm1, %v560_v1 }
 0x202   : > { %561 = vst.msk [vmem:[#allocation4] sm:$0xff] %vm360_vm1, %v559_v0 }
 0x203 PF: > { %p1054_p13 = scmp.eq.s32.totalorder %s667_s23, 1  ;;  %s920_s13 = smov [#allocation4]  }
 0x204   : > { %s572_s14 = sshll.u32 %s920_s13, 4  ;;  %s573_s14 = int_to_ptr.vmem [resolvable:$true] %s572_s14 }
 0x205   : > { %s850_s15 = scalar_lea.vmem %s573_s14, 256  ;;  %p857_p3 = scmp.lt.s32.totalorder %s573_s14, %s573_s14 }
 0x206   : > { %p851_p0 = scmp.ne.s32.totalorder %s573_s14, %s850_s15  ;;  %p858_p4 = scmp.lt.s32.totalorder %s850_s15, %s850_s15 }
 0x208   : > { %p852_p1 = pnand %p851_p0, %p1054_p13  ;;  %p859_p5 = por %p858_p4, %p857_p3 }
 0x20a   : > { %p853_p2 = pneg %p852_p1 }
 0x20c   : > { %p860_p6 = pnand %p859_p5, %p853_p2 }
 0x20e   : > { %863 = shalt.err (!%p860_p6)
}
 0x20f   : > { %s864_s23 = scalar_lea.hbm %s1100_s5, 256 }
 0x210   : > { %p865_p7 = scmp.ne.s32.totalorder %s1100_s5, %s864_s23  ;;  %p870_p10 = scmp.lt.u32.totalorder %s864_s23, %s1100_s5 }
 0x212   : > { %p866_p8 = pnand %p865_p7, %p1054_p13 }
 0x214   : > { %p867_p9 = pneg %p866_p8 }
 0x216   : > { %p872_p11 = pnand %p870_p10, %p867_p9 }
 0x218   : > { %875 = shalt.err (!%p872_p11)
}
 0x219   : > { %s921_s29 = smov 128   ;;  %s922_s18 = smov 8  }
 0x21a   : > { %798 = dma.vmem_to_hbm [thread:$0]  (%p1054_p13), %s573_s14, 256, %s1100_s5, [#allocation5], %s921_s29, %s921_s29, %s922_s18  }
 0x21b   : > { %897 = dma.done.wait (%p1054_p13), [#allocation5], 256  }
 0x21c   : > { %899 = vsyncadd (%p1054_p13), [#allocation5], 4294967040 }
 0x21d PF: > { %s16_s22 = sadd.s32 1, %s918_s22   ;;  %s1102_s18 = smov %s906_s19 }
 0x21e   : > { %p13_p12 = scmp.ge.s32.totalorder %s16_s22, 4   ;;  %s1103_s19 = smov %s989_s27 }
 0x21f   : > { %s1104_s20 = smov %s914_s21  ;;  %s1105_s21 = smov %s1107_s24 }
 0x220   :  { %15 = sbr.rel (!%p13_p12) target bundleno = 3 (0x3), region = 128 }
 0x227   :  { %588 = vsyncpa [#allocation5], 1 }
 0x228   :  { %590 = vsyncpa [#allocation5 + $0x1], 1 }

</bundles_post_ra>
